<compile_context>
chip_gen: v6e
topology: v6e:2x2x1
jax: 0.10.0
libtpu: 0.0.40
codegen_flags: <defaults>
</compile_context>

<pallas_src>
import math

import jax
import jax.numpy as jnp
from jax.experimental import pallas as pl
from jax.experimental.pallas import tpu as pltpu


def _make_kernel(dim: int, k: int):
    """Kernel over a (TR, k*dim) packed tile; each packed row holds k rows."""
    inv_d = 1.0 / float(dim)
    eps = 1e-5

    def kernel(x_ref, w_ref, b_ref, bd_ref, o_ref):
        x = x_ref[...].astype(jnp.float32)                     # (TR, KD)
        if k == 1:
            # One-pass moments over the (full-width) feature axis.
            mu = jnp.mean(x, axis=-1, keepdims=True)           # (TR, 1)
            ex2 = jnp.mean(x * x, axis=-1, keepdims=True)
            var = jnp.maximum(ex2 - mu * mu, 0.0)
            inv = jax.lax.rsqrt(var + eps)
            y = (x - mu) * inv * w_ref[...] + b_ref[...]
        else:
            # Segment sums via block-diagonal ones matmul on the idle MXU.
            bd = bd_ref[...]                                    # (KD, k) f32
            s1 = jnp.dot(x, bd, preferred_element_type=jnp.float32)       # (TR, k)
            s2 = jnp.dot(x * x, bd, preferred_element_type=jnp.float32)   # (TR, k)
            mu = s1 * inv_d
            var = jnp.maximum(s2 * inv_d - mu * mu, 0.0)
            inv = jax.lax.rsqrt(var + eps)
            # Broadcast (TR, k) stats back to (TR, KD): contract over k.
            dn = (((1,), (1,)), ((), ()))
            mu_b = jax.lax.dot_general(mu, bd, dn,
                                       preferred_element_type=jnp.float32)
            inv_b = jax.lax.dot_general(inv, bd, dn,
                                        preferred_element_type=jnp.float32)
            y = (x - mu_b) * inv_b * w_ref[...] + b_ref[...]
        o_ref[...] = y.astype(o_ref.dtype)

    return kernel


def _pick_row_tile(rows_packed: int, packed_dim: int, itemsize: int,
                   max_block_bytes: int = 4 * 1024 * 1024,
                   max_rows: int = 2048) -> int:
    """Largest 8-aligned packed-row tile fitting the per-block VMEM budget."""
    tr = max_block_bytes // max(1, packed_dim * itemsize)
    tr = min(tr, max_rows)
    # Keep >= 2 grid steps when the input allows it (v7x has 2 TensorCores).
    half = (rows_packed + 1) // 2
    half = ((half + 7) // 8) * 8
    tr = min(tr, half)
    tr = max(8, (tr // 8) * 8)
    return tr


def withbias_layernorm(x, weight, bias):
    """x: (..., dim); weight/bias: (dim,). Returns same shape/dtype as x."""
    dim = x.shape[-1]
    assert weight.shape == (dim,) and bias.shape == (dim,)
    orig_shape = x.shape
    orig_dtype = x.dtype

    rows = 1
    for s in orig_shape[:-1]:
        rows *= int(s)

    # Lane-packing factor: pack k original rows per block row so the minor
    # dim is 128-lane dense.  Fall back to k=1 for awkward / already-wide dims.
    packed = (dim * 128) // math.gcd(dim, 128)   # lcm(dim, 128)
    k = packed // dim
    if k > 16 or packed > 2048:
        k, packed = 1, dim
    # TODO(synk): dims so large that even 8 rows x dim exceeds VMEM would need
    # an additional feature-dim tiling pass; not implemented here.

    itemsize = jnp.dtype(orig_dtype).itemsize
    rows_packed = -(-rows // k)                          # ceil
    tr = _pick_row_tile(rows_packed, packed, itemsize)
    grid_n = -(-rows_packed // tr)                       # ceil
    rows_packed_pad = grid_n * tr
    rows_pad = rows_packed_pad * k

    x2 = x.reshape(rows, dim)
    if rows_pad != rows:
        # Zero rows are harmless for LayerNorm (finite output) and sliced off.
        x2 = jnp.pad(x2, ((0, rows_pad - rows), (0, 0)))
    x2 = x2.reshape(rows_packed_pad, packed)

    # Pre-cast / pre-tile affine params in the wrapper (no per-step VPU work).
    w2 = jnp.tile(weight.astype(jnp.float32), (k,)).reshape(1, packed)
    b2 = jnp.tile(bias.astype(jnp.float32), (k,)).reshape(1, packed)

    # Block-diagonal ones matrix mapping packed features -> segment id.
    seg = jnp.arange(packed, dtype=jnp.int32) // dim
    bd = (seg[:, None] == jnp.arange(k, dtype=jnp.int32)[None, :]).astype(
        jnp.float32)                                      # (packed, k)

    kernel = _make_kernel(dim, k)

    out = pl.pallas_call(
        kernel,
        out_shape=jax.ShapeDtypeStruct((rows_packed_pad, packed), orig_dtype),
        grid_spec=pltpu.PrefetchScalarGridSpec(
            num_scalar_prefetch=0,
            grid=(grid_n,),
            in_specs=[
                # NOTE: pipeline_mode=pl.Buffered(3) on this spec is a
                # further ~5-10% knob to sweep once tiles are large.
                pl.BlockSpec((tr, packed), lambda i: (i, 0)),
                pl.BlockSpec((1, packed), lambda i: (0, 0)),
                pl.BlockSpec((1, packed), lambda i: (0, 0)),
                pl.BlockSpec((packed, k), lambda i: (0, 0)),
            ],
            out_specs=pl.BlockSpec((tr, packed), lambda i: (i, 0)),
        ),
        compiler_params=pltpu.CompilerParams(
            dimension_semantics=("parallel",),
            vmem_limit_bytes=48 * 1024 * 1024,
        ),
    )(x2, w2, b2, bd)

    out = out.reshape(rows_pad, dim)
    if rows_pad != rows:
        out = out[:rows]
    return out.reshape(orig_shape)


if __name__ == "__main__":
    key = jax.random.PRNGKey(0)

    def reference(x, w, b):
        mu = jnp.mean(x, axis=-1, keepdims=True)
        sigma = jnp.mean((x - mu) ** 2, axis=-1, keepdims=True)
        return (x - mu) / jnp.sqrt(sigma + 1e-5) * w + b

    # Case 1: typical restoration-net tokens (B, H*W, C), small C=32.
    k1, k2, k3, key = jax.random.split(key, 4)
    dim = 32
    x = jax.random.normal(k1, (2, 16 * 16, dim), dtype=jnp.float32)
    w = jax.random.normal(k2, (dim,), dtype=jnp.float32)
    b = jax.random.normal(k3, (dim,), dtype=jnp.float32)
    out = jax.block_until_ready(withbias_layernorm(x, w, b))
    ref = reference(x, w, b)
    assert jnp.allclose(out, ref, atol=1e-4, rtol=1e-4), "case 1 mismatch"

    # Case 2: odd row count + dim not a multiple of 128 -> exercises the
    # cdiv/zero-pad tail path and k=8 lane packing.
    k1, k2, k3, key = jax.random.split(key, 4)
    dim = 48
    x = jax.random.normal(k1, (3, 100, dim), dtype=jnp.float32) * 2.0 + 0.5
    w = jax.random.normal(k2, (dim,), dtype=jnp.float32)
    b = jax.random.normal(k3, (dim,), dtype=jnp.float32)
    out = jax.block_until_ready(withbias_layernorm(x, w, b))
    ref = reference(x, w, b)
    assert jnp.allclose(out, ref, atol=1e-4, rtol=1e-4), "case 2 mismatch"

    print("KERNEL_OK")
</pallas_src>

<mosaic_0001>
module attributes {stable_mosaic.version = 11 : i64} {
  func.func @kernel(%arg0: i32, %arg1: memref<64x128xf32, #tpu.memory_space<vmem>>, %arg2: memref<1x128xf32, #tpu.memory_space<vmem>>, %arg3: memref<1x128xf32, #tpu.memory_space<vmem>>, %arg4: memref<128x4xf32, #tpu.memory_space<vmem>>, %arg5: memref<64x128xf32, #tpu.memory_space<vmem>>) attributes {dimension_semantics = [#tpu.dimension_semantics<parallel>], iteration_bounds = array<i64: 2>, scalar_prefetch = 0 : i64, scratch_operands = 0 : i64, tpu.core_type = #tpu.core_type<tc>, window_params = [{transform_indices = @transform_0, window_bounds = array<i64: 64, 128>}, {pipeline_mode = #tpu.pipeline_mode<synchronous>, transform_indices = @transform_1, window_bounds = array<i64: 1, 128>}, {pipeline_mode = #tpu.pipeline_mode<synchronous>, transform_indices = @transform_2, window_bounds = array<i64: 1, 128>}, {pipeline_mode = #tpu.pipeline_mode<synchronous>, transform_indices = @transform_3, window_bounds = array<i64: 128, 4>}, {transform_indices = @transform_4, window_bounds = array<i64: 64, 128>}]} {
    %c0 = arith.constant 0 : index
    %c0_0 = arith.constant 0 : index
    %0 = vector.load %arg1[%c0, %c0_0] : memref<64x128xf32, #tpu.memory_space<vmem>>, vector<64x128xf32>
    %c0_1 = arith.constant 0 : index
    %c0_2 = arith.constant 0 : index
    %1 = vector.load %arg4[%c0_1, %c0_2] : memref<128x4xf32, #tpu.memory_space<vmem>>, vector<128x4xf32>
    %cst = arith.constant dense<0.000000e+00> : vector<64x4xf32>
    %2 = tpu.matmul %0, %1, %cst {dimension_numbers = #tpu.dot_dimension_numbers<[1], [0], [0], [1], [0, 0, 1, 1], [], []>} : vector<64x128xf32>, vector<128x4xf32>, vector<64x4xf32> -> vector<64x4xf32>
    %3 = arith.mulf %0, %0 : vector<64x128xf32>
    %cst_3 = arith.constant dense<0.000000e+00> : vector<64x4xf32>
    %4 = tpu.matmul %3, %1, %cst_3 {dimension_numbers = #tpu.dot_dimension_numbers<[1], [0], [0], [1], [0, 0, 1, 1], [], []>} : vector<64x128xf32>, vector<128x4xf32>, vector<64x4xf32> -> vector<64x4xf32>
    %cst_4 = arith.constant 3.125000e-02 : f32
    %5 = vector.broadcast %cst_4 : f32 to vector<64x4xf32>
    %6 = arith.mulf %2, %5 : vector<64x4xf32>
    %cst_5 = arith.constant 3.125000e-02 : f32
    %7 = vector.broadcast %cst_5 : f32 to vector<64x4xf32>
    %8 = arith.mulf %4, %7 : vector<64x4xf32>
    %9 = arith.mulf %6, %6 : vector<64x4xf32>
    %10 = arith.subf %8, %9 : vector<64x4xf32>
    %cst_6 = arith.constant 0.000000e+00 : f32
    %11 = vector.broadcast %cst_6 : f32 to vector<64x4xf32>
    %12 = arith.maximumf %10, %11 : vector<64x4xf32>
    %cst_7 = arith.constant 9.99999974E-6 : f32
    %13 = vector.broadcast %cst_7 : f32 to vector<64x4xf32>
    %14 = arith.addf %12, %13 : vector<64x4xf32>
    %15 = math.rsqrt %14 : vector<64x4xf32>
    %cst_8 = arith.constant dense<0.000000e+00> : vector<64x128xf32>
    %16 = tpu.matmul %6, %1, %cst_8 {dimension_numbers = #tpu.dot_dimension_numbers<[1], [1], [0], [0], [0, 0, 1, 0], [], []>} : vector<64x4xf32>, vector<128x4xf32>, vector<64x128xf32> -> vector<64x128xf32>
    %cst_9 = arith.constant dense<0.000000e+00> : vector<64x128xf32>
    %17 = tpu.matmul %15, %1, %cst_9 {dimension_numbers = #tpu.dot_dimension_numbers<[1], [1], [0], [0], [0, 0, 1, 0], [], []>} : vector<64x4xf32>, vector<128x4xf32>, vector<64x128xf32> -> vector<64x128xf32>
    %18 = arith.subf %0, %16 : vector<64x128xf32>
    %19 = arith.mulf %18, %17 : vector<64x128xf32>
    %c0_10 = arith.constant 0 : index
    %c0_11 = arith.constant 0 : index
    %20 = vector.load %arg2[%c0_10, %c0_11] : memref<1x128xf32, #tpu.memory_space<vmem>>, vector<1x128xf32>
    %21 = vector.broadcast %20 : vector<1x128xf32> to vector<64x128xf32>
    %22 = arith.mulf %19, %21 : vector<64x128xf32>
    %c0_12 = arith.constant 0 : index
    %c0_13 = arith.constant 0 : index
    %23 = vector.load %arg3[%c0_12, %c0_13] : memref<1x128xf32, #tpu.memory_space<vmem>>, vector<1x128xf32>
    %24 = vector.broadcast %23 : vector<1x128xf32> to vector<64x128xf32>
    %25 = arith.addf %22, %24 : vector<64x128xf32>
    %c0_14 = arith.constant 0 : index
    %c0_15 = arith.constant 0 : index
    %26 = vector.load %arg5[%c0_14, %c0_15] : memref<64x128xf32, #tpu.memory_space<vmem>>, vector<64x128xf32>
    tpu.vector_store %arg5[%c0_14, %c0_15], %25 {strides = array<i32>} : memref<64x128xf32, #tpu.memory_space<vmem>>, vector<64x128xf32>,
    return
  }
  func.func @transform_0(%arg0: i32) -> (i32, i32) {
    %c0_i32 = arith.constant 0 : i32
    %c0_i32_0 = arith.constant 0 : i32
    return %arg0, %c0_i32 : i32, i32
  }
  func.func @transform_1(%arg0: i32) -> (i32, i32) {
    %c0_i32 = arith.constant 0 : i32
    %c0_i32_0 = arith.constant 0 : i32
    %c0_i32_1 = arith.constant 0 : i32
    return %c0_i32, %c0_i32_0 : i32, i32
  }
  func.func @transform_2(%arg0: i32) -> (i32, i32) {
    %c0_i32 = arith.constant 0 : i32
    %c0_i32_0 = arith.constant 0 : i32
    %c0_i32_1 = arith.constant 0 : i32
    return %c0_i32, %c0_i32_0 : i32, i32
  }
  func.func @transform_3(%arg0: i32) -> (i32, i32) {
    %c0_i32 = arith.constant 0 : i32
    %c0_i32_0 = arith.constant 0 : i32
    %c0_i32_1 = arith.constant 0 : i32
    return %c0_i32, %c0_i32_0 : i32, i32
  }
  func.func @transform_4(%arg0: i32) -> (i32, i32) {
    %c0_i32 = arith.constant 0 : i32
    %c0_i32_0 = arith.constant 0 : i32
    return %arg0, %c0_i32 : i32, i32
  }
}

</mosaic_0001>

<bundles_post_ra>
// kernel: tpu_custom_call.1
= control target key start
LH: loop header
LB: loop body
LE: loop exit
PB: predicated region body
PF: predicated region fallthrough
CT: control target
= control target key end

     0   :  { %9 = vsyncpa [#allocation3], 0  ;;  %s1884_s0 = inlined_call_operand.vmem [shape: f32[128,128], index: 0, kind: input, shape index: {}]   ;;  %s1885_s1 = inlined_call_operand.vmem [shape: f32[1,128], index: 1, kind: input, shape index: {}]   ;;  %s1886_s2 = inlined_call_operand.vmem [shape: f32[1,128], index: 2, kind: input, shape index: {}]   ;;  %s1887_s3 = inlined_call_operand.vmem [shape: f32[128,4], index: 3, kind: input, shape index: {}]   ;;  %s1888_s4 = inlined_call_operand.hbm [shape: f32[128,128], index: 4, kind: output, shape index: {}]  }
   0x1   :  { %11 = vsyncpa [#allocation3 + $0x1], 0  ;;  %s1416_s15 = smov 0   ;;  %s1418_s16 = smov 0  }
   0x2   :  { %s1420_s17 = smov 0   ;;  %s1422_s18 = smov 0  }
   0x3 LB: > { %s1437_s19 = sadd.s32 4294967295, %s1386_s18   ;;  %s934_s20 = sadd.s32 4294967294, %s1386_s18   ;;  %s1386_s18 = sphi %s1422_s18, %s1894_s18   ;;  %s1382_s17 = sphi %s1420_s17, %s1893_s17   ;;  %s1378_s16 = sphi %s1418_s16, %s1892_s16   ;;  %s1374_s15 = sphi %s1416_s15, %s1891_s15  }
   0x4   : > { %s1441_s21 = sadd.s32 1, %s1386_s18   ;;  %s113_s22 = sadd.s32 1, %s1382_s17 }
   0x5   : > { %s110_s23 = ssub.s32 %s1386_s18, %s1441_s21  ;;  %p123_p0 = scmp.ne.s32.totalorder %s1382_s17, %s1378_s16 }
   0x6   : > { %p111_p1 = scmp.eq.s32.totalorder %s110_s23, 0  ;;  %p124_p2 = scmp.eq.s32.totalorder %s1437_s19, 1 }
   0x7   : > { %p129_p3 = scmp.ne.s32.totalorder %s1378_s16, %s1374_s15  ;;  %p130_p4 = scmp.eq.s32.totalorder %s934_s20, 1 }
   0x8   : > { %s1452_s24 = scalar_select %p111_p1, %s1382_s17, %s113_s22  }
   0x9   : > { %p1454_p5 = por %p124_p2, %p123_p0  ;;  %p1458_p6 = por %p130_p4, %p129_p3 }
   0xa   : > { %p937_p7 = scmp.ge.s32.totalorder %s1386_s18, 1  ;;  %p166_p8 = scmp.lt.s32.totalorder %s1386_s18, 3 }
   0xc   : > { %p167_p9 = pnand %p937_p7, %p166_p8 }
   0xd   : > { %s939_s13 = sshll.u32 (!%p167_p9), %s1437_s19, 3  ;;  %s189_s30 = sand.u32 (!%p167_p9), 1, %s1378_s16  }
   0xe   : > { %170 = sbr.rel (%p167_p9) target bundleno = 501 (0x1f5), region = 36  ;;  %p193_p10 = scmp.lt.s32.totalorder (!%p167_p9), %s939_s13, 15 }
   0xf   : > { %s938_s7 = sshll.u32 (!%p167_p9), %s189_s30, 6  ;;  %s996_s11 = sshll.u32 (!%p167_p9), %s1437_s19, 10 }
  0x10   : > { %s1819_s10 = scalar_lea.vmem (!%p167_p9), [#allocation2], %s938_s7  ;;  %s1836_s20 = scalar_lea.hbm (!%p167_p9), %s1888_s4, %s996_s11 }
  0x11   : > { %s872_s12 = sshll.u32 (!%p167_p9), %s1819_s10, 4  ;;  %s1844_s22 = scalar_lea.sflag (!%p167_p9), [#allocation3], %s189_s30  ;;  %s1838_s12 = int_to_ptr.vmem [resolvable:$true] %s872_s12 }
  0x12   : > { %s1326_s19 = scalar_lea.vmem (!%p167_p9), %s1838_s12, 1024  ;;  %s1388_s23 = smov (!%p167_p9), [#allocation2]  }
  0x13   : > { %v1467_v0 = vld [vmem:[%s1887_s3 + $0x78] sm:$0xff]  ;;  %v1472_v1 = vld [vmem:[%s1887_s3 + $0x70] sm:$0xff]  ;;  %v1481_v2 = vld [vmem:[%s1887_s3 + $0x68] sm:$0xff]  ;;  %s1896_s13 = smov (!%p193_p10, %s939_s13), 15  ;;  %vm497_vm0 = vcmask 31744   ;;  %p1327_p11 = scmp.ne.s32.totalorder %s1838_s12, %s1326_s19 }
  0x14   : > { %1093 = vmatprep.subr.mxu0 %v1467_v0  ;;  %1137 = vmatprep.subr.mxu1 %v1467_v0  ;;  %v1490_v3 = vld [vmem:[%s1887_s3 + $0x60] sm:$0xff]  ;;  %v1499_v4 = vld [vmem:[%s1887_s3 + $0x58] sm:$0xff]  ;;  %v1508_v5 = vld [vmem:[%s1887_s3 + $0x50] sm:$0xff]  ;;  %s940_s9 = sshll.u32 %s1896_s13, 3  ;;  %s1330_s27 = sshll.u32 %s1388_s23, 4  ;;  %s1331_s27 = int_to_ptr.vmem [resolvable:$false] %s1330_s27 }
  0x15   : > { %1094 = vmatpush3.msra.mxu0 %v1467_v0  ;;  %1138 = vmatpush3.msra.mxu1 %v1467_v0  ;;  %v1518_v6 = vld [vmem:[%s1887_s3 + $0x48] sm:$0xff]  ;;  %v1527_v7 = vld [vmem:[%s1887_s3 + $0x40] sm:$0xff]  ;;  %v1536_v8 = vld [vmem:[%s1887_s3 + $0x38] sm:$0xff]  ;;  %s1579_s13 = scalar_lea.vmem %s1884_s0, %s940_s9  ;;  %p1328_p12 = pnand %p1327_p11, %p1454_p5 }
  0x16   : > { %1095 = vmatprep.subr.mxu0 %v1472_v1  ;;  %1139 = vmatprep.subr.mxu1 %v1472_v1  ;;  %v1545_v9 = vld [vmem:[%s1887_s3 + $0x30] sm:$0xff]  ;;  %v1554_v10 = vld [vmem:[%s1887_s3 + $0x28] sm:$0xff]  ;;  %v1563_v11 = vld [vmem:[%s1887_s3 + $0x20] sm:$0xff]  ;;  %s1332_s28 = scalar_lea.vmem %s1331_s27, 2048  ;;  %p1333_p0 = scmp.lt.s32.totalorder %s1838_s12, %s1331_s27 }
  0x17   : > { %1096 = vmatpush3.msra.mxu0 %v1472_v1  ;;  %1140 = vmatpush3.msra.mxu1 %v1472_v1  ;;  %v1572_v12 = vld [vmem:[%s1887_s3 + $0x18] sm:$0xff]  ;;  %v1586_v13 = vld [vmem:[%s1887_s3 + $0x10] sm:$0xff]  ;;  %v1595_v14 = vld [vmem:[%s1887_s3 + $0x8] sm:$0xff]  ;;  %p1329_p13 = pneg %p1328_p12  ;;  %p1334_p1 = scmp.lt.s32.totalorder %s1332_s28, %s1326_s19 }
  0x18   : > { %1097 = vmatprep.subr.mxu0 %v1481_v2  ;;  %1141 = vmatprep.subr.mxu1 %v1481_v2  ;;  %v1598_v15 = vld [vmem:[%s1579_s13] sm:$0xff]  ;;  %v1603_v16 = vld [vmem:[%s1579_s13 + $0x8] sm:$0xff]  ;;  %v1613_v18 = vld [vmem:[%s1579_s13 + $0x10] sm:$0xff] }
  0x19   : > { %1098 = vmatpush3.msra.mxu0 %v1481_v2  ;;  %1142 = vmatpush3.msra.mxu1 %v1481_v2  ;;  %v1610_v17 = vld [vmem:[%s1887_s3] sm:$0xff]  ;;  %v328_v19 = vmul.f32 %v1598_v15, %v1598_v15  ;;  %v329_v20 = vmul.f32 %v1603_v16, %v1603_v16  ;;  %v330_v21 = vmul.f32 %v1613_v18, %v1613_v18  ;;  %v1628_v22 = vld [vmem:[%s1579_s13 + $0x18] sm:$0xff]  ;;  %v1643_v26 = vld [vmem:[%s1579_s13 + $0x28] sm:$0xff]  ;;  %p1335_p2 = por %p1334_p1, %p1333_p0 }
  0x1a   : > { %1099 = vmatprep.subr.mxu0 %v1490_v3  ;;  %1143 = vmatprep.subr.mxu1 %v1490_v3  ;;  %v1633_v23 = vld [vmem:[%s1579_s13 + $0x20] sm:$0xff]  ;;  %v331_v24 = vmul.f32 %v1628_v22, %v1628_v22  ;;  %v1646_v27 = vld [vmem:[%s1579_s13 + $0x30] sm:$0xff]  ;;  %v333_v28 = vmul.f32 %v1643_v26, %v1643_v26  ;;  %v1663_v30 = vld [vmem:[%s1579_s13 + $0x38] sm:$0xff] }
  0x1b   : > { %1100 = vmatpush3.msra.mxu0 %v1490_v3  ;;  %1144 = vmatpush3.msra.mxu1 %v1490_v3  ;;  %v332_v25 = vmul.f32 %v1633_v23, %v1633_v23  ;;  %v334_v29 = vmul.f32 %v1646_v27, %v1646_v27  ;;  %v335_v31 = vmul.f32 %v1663_v30, %v1663_v30  ;;  %p1336_p3 = pnand %p1335_p2, %p1329_p13 }
  0x1c   : > { %1101 = vmatprep.subr.mxu0 %v1499_v4  ;;  %1145 = vmatprep.subr.mxu1 %v1499_v4 }
  0x1d   : > { %1102 = vmatpush3.msra.mxu0 %v1499_v4  ;;  %1146 = vmatpush3.msra.mxu1 %v1499_v4 }
  0x1e   : > { %1103 = vmatprep.subr.mxu0 %v1508_v5  ;;  %1147 = vmatprep.subr.mxu1 %v1508_v5 }
  0x1f   : > { %1104 = vmatpush3.msra.mxu0 %v1508_v5  ;;  %1148 = vmatpush3.msra.mxu1 %v1508_v5 }
  0x20   : > { %1105 = vmatprep.subr.mxu0 %v1518_v6  ;;  %1149 = vmatprep.subr.mxu1 %v1518_v6 }
  0x21   : > { %1106 = vmatpush3.msra.mxu0 %v1518_v6  ;;  %1150 = vmatpush3.msra.mxu1 %v1518_v6 }
  0x22   : > { %1107 = vmatprep.subr.mxu0 %v1527_v7  ;;  %1151 = vmatprep.subr.mxu1 %v1527_v7 }
  0x23   : > { %1108 = vmatpush3.msra.mxu0 %v1527_v7  ;;  %1152 = vmatpush3.msra.mxu1 %v1527_v7 }
  0x24   : > { %1109 = vmatprep.subr.mxu0 %v1536_v8  ;;  %1153 = vmatprep.subr.mxu1 %v1536_v8 }
  0x25   : > { %1110 = vmatpush3.msra.mxu0 %v1536_v8  ;;  %1154 = vmatpush3.msra.mxu1 %v1536_v8 }
  0x26   : > { %1111 = vmatprep.subr.mxu0 %v1545_v9  ;;  %1155 = vmatprep.subr.mxu1 %v1545_v9 }
  0x27   : > { %1112 = vmatpush3.msra.mxu0 %v1545_v9  ;;  %1156 = vmatpush3.msra.mxu1 %v1545_v9 }
  0x28   : > { %1113 = vmatprep.subr.mxu0 %v1554_v10  ;;  %1157 = vmatprep.subr.mxu1 %v1554_v10 }
  0x29   : > { %1114 = vmatpush3.msra.mxu0 %v1554_v10  ;;  %1158 = vmatpush3.msra.mxu1 %v1554_v10 }
  0x2a   : > { %1115 = vmatprep.subr.mxu0 %v1563_v11  ;;  %1159 = vmatprep.subr.mxu1 %v1563_v11 }
  0x2b   : > { %1116 = vmatpush3.msra.mxu0 %v1563_v11  ;;  %1160 = vmatpush3.msra.mxu1 %v1563_v11 }
  0x2c   : > { %1117 = vmatprep.subr.mxu0 %v1572_v12  ;;  %1161 = vmatprep.subr.mxu1 %v1572_v12 }
  0x2d   : > { %1118 = vmatpush3.msra.mxu0 %v1572_v12  ;;  %1162 = vmatpush3.msra.mxu1 %v1572_v12 }
  0x2e   : > { %1119 = vmatprep.subr.mxu0 %v1586_v13  ;;  %1163 = vmatprep.subr.mxu1 %v1586_v13 }
  0x2f   : > { %1120 = vmatpush3.msra.mxu0 %v1586_v13  ;;  %1164 = vmatpush3.msra.mxu1 %v1586_v13 }
  0x30   : > { %1121 = vmatprep.subr.mxu0 %v1595_v14  ;;  %1165 = vmatprep.subr.mxu1 %v1595_v14 }
  0x31   : > { %1122 = vmatpush3.msra.mxu0 %v1595_v14  ;;  %1166 = vmatpush3.msra.mxu1 %v1595_v14 }
  0x32   : > { %1123 = vmatprep.subr.mxu0 %v1610_v17  ;;  %1167 = vmatprep.subr.mxu1 %v1610_v17 }
  0x33   : > { %1124 = vmatpush3.msra.mxu0 %v1610_v17  ;;  %1125 = vmatprep.mubr.f32.mxu0 %v1598_v15 }
  0x34   : > { %1168 = vmatpush3.msra.mxu1 %v1610_v17  ;;  %1169 = vmatprep.mubr.f32.mxu1 %v328_v19 }
  0x35   : > { %1126 = vmatmul.mubr.f32.vlgmr.msra.gmra.mxu0 %v1603_v16  ;;  %1170 = vmatmul.mubr.f32.vlgmr.msra.gmra.mxu1 %v329_v20 }
  0x36   : > { %1128 = vmatprep.mubr.f32.mxu0 %v1613_v18  ;;  %1172 = vmatprep.mubr.f32.mxu1 %v330_v21 }
  0x37   : > { %1181 = vmatprep.subr.msk.mxu0 %vm497_vm0, %v1467_v0  ;;  %1225 = vmatprep.subr.msk.mxu1 %vm497_vm0, %v1467_v0 }
  0x38   : > { %1182 = vmatpush3.xpose.msk.msra.mxu0 %vm497_vm0, %v1467_v0  ;;  %1226 = vmatpush3.xpose.msk.msra.mxu1 %vm497_vm0, %v1467_v0 }
  0x39   : > { %1129 = vmatmul.mubr.f32.gmra.mxu0 %v1628_v22  ;;  %1173 = vmatmul.mubr.f32.gmra.mxu1 %v331_v24 }
  0x3a   : > { %1131 = vmatprep.mubr.f32.mxu0 %v1633_v23  ;;  %1175 = vmatprep.mubr.f32.mxu1 %v332_v25 }
  0x3b   : > { %1183 = vmatprep.subr.msk.mxu0 %vm497_vm0, %v1472_v1  ;;  %1227 = vmatprep.subr.msk.mxu1 %vm497_vm0, %v1472_v1 }
  0x3c   : > { %1184 = vmatpush3.xpose.msk.msra.mxu0 %vm497_vm0, %v1472_v1  ;;  %1228 = vmatpush3.xpose.msk.msra.mxu1 %vm497_vm0, %v1472_v1 }
  0x3d   : > { %1132 = vmatmul.mubr.f32.gmra.mxu0 %v1643_v26  ;;  %1176 = vmatmul.mubr.f32.gmra.mxu1 %v333_v28 }
  0x3e   : > { %1134 = vmatprep.mubr.f32.mxu0 %v1646_v27  ;;  %1178 = vmatprep.mubr.f32.mxu1 %v334_v29 }
  0x3f   : > { %1185 = vmatprep.subr.msk.mxu0 %vm497_vm0, %v1481_v2  ;;  %1229 = vmatprep.subr.msk.mxu1 %vm497_vm0, %v1481_v2 }
  0x40   : > { %1186 = vmatpush3.xpose.msk.msra.mxu0 %vm497_vm0, %v1481_v2  ;;  %1230 = vmatpush3.xpose.msk.msra.mxu1 %vm497_vm0, %v1481_v2 }
  0x41   : > { %1135 = vmatmul.mubr.f32.gmra.mxu0 %v1663_v30  ;;  %1179 = vmatmul.mubr.f32.gmra.mxu1 %v335_v31 }
  0x42   : > { %1187 = vmatprep.subr.msk.mxu0 %vm497_vm0, %v1490_v3  ;;  %1231 = vmatprep.subr.msk.mxu1 %vm497_vm0, %v1490_v3 }
  0x44   : > { %1188 = vmatpush3.xpose.msk.msra.mxu0 %vm497_vm0, %v1490_v3  ;;  %1232 = vmatpush3.xpose.msk.msra.mxu1 %vm497_vm0, %v1490_v3 }
  0x45   : > { %1189 = vmatprep.subr.msk.mxu0 %vm497_vm0, %v1499_v4  ;;  %1233 = vmatprep.subr.msk.mxu1 %vm497_vm0, %v1499_v4 }
  0x48   : > { %1190 = vmatpush3.xpose.msk.msra.mxu0 %vm497_vm0, %v1499_v4  ;;  %1234 = vmatpush3.xpose.msk.msra.mxu1 %vm497_vm0, %v1499_v4 }
  0x49   : > { %1191 = vmatprep.subr.msk.mxu0 %vm497_vm0, %v1508_v5  ;;  %1235 = vmatprep.subr.msk.mxu1 %vm497_vm0, %v1508_v5 }
  0x4c   : > { %1192 = vmatpush3.xpose.msk.msra.mxu0 %vm497_vm0, %v1508_v5  ;;  %1236 = vmatpush3.xpose.msk.msra.mxu1 %vm497_vm0, %v1508_v5 }
  0x4d   : > { %1193 = vmatprep.subr.msk.mxu0 %vm497_vm0, %v1518_v6  ;;  %1237 = vmatprep.subr.msk.mxu1 %vm497_vm0, %v1518_v6 }
  0x50   : > { %1194 = vmatpush3.xpose.msk.msra.mxu0 %vm497_vm0, %v1518_v6  ;;  %1238 = vmatpush3.xpose.msk.msra.mxu1 %vm497_vm0, %v1518_v6 }
  0x51   : > { %1195 = vmatprep.subr.msk.mxu0 %vm497_vm0, %v1527_v7  ;;  %1239 = vmatprep.subr.msk.mxu1 %vm497_vm0, %v1527_v7 }
  0x54   : > { %1196 = vmatpush3.xpose.msk.msra.mxu0 %vm497_vm0, %v1527_v7  ;;  %1240 = vmatpush3.xpose.msk.msra.mxu1 %vm497_vm0, %v1527_v7 }
  0x55   : > { %1197 = vmatprep.subr.msk.mxu0 %vm497_vm0, %v1536_v8  ;;  %1241 = vmatprep.subr.msk.mxu1 %vm497_vm0, %v1536_v8 }
  0x58   : > { %1198 = vmatpush3.xpose.msk.msra.mxu0 %vm497_vm0, %v1536_v8  ;;  %1242 = vmatpush3.xpose.msk.msra.mxu1 %vm497_vm0, %v1536_v8 }
  0x59   : > { %1199 = vmatprep.subr.msk.mxu0 %vm497_vm0, %v1545_v9  ;;  %1243 = vmatprep.subr.msk.mxu1 %vm497_vm0, %v1545_v9 }
  0x5c   : > { %1200 = vmatpush3.xpose.msk.msra.mxu0 %vm497_vm0, %v1545_v9  ;;  %1244 = vmatpush3.xpose.msk.msra.mxu1 %vm497_vm0, %v1545_v9 }
  0x5d   : > { %1201 = vmatprep.subr.msk.mxu0 %vm497_vm0, %v1554_v10  ;;  %1245 = vmatprep.subr.msk.mxu1 %vm497_vm0, %v1554_v10 }
  0x60   : > { %1202 = vmatpush3.xpose.msk.msra.mxu0 %vm497_vm0, %v1554_v10  ;;  %1246 = vmatpush3.xpose.msk.msra.mxu1 %vm497_vm0, %v1554_v10 }
  0x61   : > { %1203 = vmatprep.subr.msk.mxu0 %vm497_vm0, %v1563_v11  ;;  %1247 = vmatprep.subr.msk.mxu1 %vm497_vm0, %v1563_v11 }
  0x64   : > { %1204 = vmatpush3.xpose.msk.msra.mxu0 %vm497_vm0, %v1563_v11  ;;  %1248 = vmatpush3.xpose.msk.msra.mxu1 %vm497_vm0, %v1563_v11 }
  0x65   : > { %1205 = vmatprep.subr.msk.mxu0 %vm497_vm0, %v1572_v12  ;;  %1249 = vmatprep.subr.msk.mxu1 %vm497_vm0, %v1572_v12 }
  0x68   : > { %1206 = vmatpush3.xpose.msk.msra.mxu0 %vm497_vm0, %v1572_v12  ;;  %1250 = vmatpush3.xpose.msk.msra.mxu1 %vm497_vm0, %v1572_v12 }
  0x69   : > { %1207 = vmatprep.subr.msk.mxu0 %vm497_vm0, %v1586_v13  ;;  %1251 = vmatprep.subr.msk.mxu1 %vm497_vm0, %v1586_v13 }
  0x6c   : > { %1208 = vmatpush3.xpose.msk.msra.mxu0 %vm497_vm0, %v1586_v13  ;;  %1252 = vmatpush3.xpose.msk.msra.mxu1 %vm497_vm0, %v1586_v13 }
  0x6d   : > { %1209 = vmatprep.subr.msk.mxu0 %vm497_vm0, %v1595_v14  ;;  %1253 = vmatprep.subr.msk.mxu1 %vm497_vm0, %v1595_v14 }
  0x70   : > { %1210 = vmatpush3.xpose.msk.msra.mxu0 %vm497_vm0, %v1595_v14  ;;  %1254 = vmatpush3.xpose.msk.msra.mxu1 %vm497_vm0, %v1595_v14 }
  0x71   : > { %1211 = vmatprep.subr.msk.mxu0 %vm497_vm0, %v1610_v17  ;;  %1255 = vmatprep.subr.msk.mxu1 %vm497_vm0, %v1610_v17 }
  0x74   : > { %1212 = vmatpush3.xpose.msk.msra.mxu0 %vm497_vm0, %v1610_v17  ;;  %1256 = vmatpush3.xpose.msk.msra.mxu1 %vm497_vm0, %v1610_v17 }
  0xf5   : > { %v1127_v32 = vpop.f32.mrf.mxu0  ;;  %v1171_v33 = vpop.f32.mrf.mxu1 }
  0xf6   : > { %v442_v34 = vmul.f32 0.03125, %v1127_v32  ;;  %v450_v35 = vmul.f32 0.03125, %v1171_v33 }
  0xf7   : > { %v289_v36 = vpop.f32.mrf.mxu0  ;;  %v402_v37 = vpop.f32.mrf.mxu1 }
  0xf8   : > { %v458_v38 = vmul.f32 %v442_v34, %v442_v34  ;;  %v441_v39 = vmul.f32 0.03125, %v289_v36  ;;  %v449_v40 = vmul.f32 0.03125, %v402_v37 }
  0xf9   : > { %v1130_v41 = vpop.f32.mrf.mxu0  ;;  %v1174_v42 = vpop.f32.mrf.mxu1 }
  0xfa   : > { %v466_v43 = vsub.f32 %v450_v35, %v458_v38  ;;  %v457_v44 = vmul.f32 %v441_v39, %v441_v39  ;;  %v444_v45 = vmul.f32 0.03125, %v1130_v41  ;;  %v452_v46 = vmul.f32 0.03125, %v1174_v42  ;;  %1213 = vmatprep.mubr.msk.f32.mxu0 %vm497_vm0, %v441_v39 }
  0xfb   : > { %v299_v47 = vpop.f32.mrf.mxu0  ;;  %v412_v48 = vpop.f32.mrf.mxu1  ;;  %1214 = vmatmul.mubr.msk.f32.vlgmr.msra.gmra.mxu0 %vm497_vm0, %v442_v34 }
  0xfc   : > { %v474_v49 = vmax.f32 %v466_v43, 0.0  ;;  %v465_v50 = vsub.f32 %v449_v40, %v457_v44  ;;  %v460_v51 = vmul.f32 %v444_v45, %v444_v45  ;;  %v443_v52 = vmul.f32 0.03125, %v299_v47 }
  0xfd   : > { %v451_v53 = vmul.f32 0.03125, %v412_v48  ;;  %v1133_v54 = vpop.f32.mrf.mxu0  ;;  %v1177_v55 = vpop.f32.mrf.mxu1 }
  0xfe   : > { %v482_v56 = vadd.f32 1e-05, %v474_v49  ;;  %v473_v57 = vmax.f32 %v465_v50, 0.0  ;;  %v468_v58 = vsub.f32 %v452_v46, %v460_v51  ;;  %v459_v59 = vmul.f32 %v443_v52, %v443_v52  ;;  %1216 = vmatprep.mubr.msk.f32.mxu0 %vm497_vm0, %v443_v52 }
  0xff   : > { %v446_v60 = vmul.f32 0.03125, %v1133_v54  ;;  %v454_v61 = vmul.f32 0.03125, %v1177_v55  ;;  %v309_v62 = vpop.f32.mrf.mxu0  ;;  %v422_v63 = vpop.f32.mrf.mxu1  ;;  %1217 = vmatmul.mubr.msk.f32.gmra.mxu0 %vm497_vm0, %v444_v45  ;;  %v989_v55 = vld [vmem:[%s1885_s1] ss:$0 sm:$0xff] }
 0x100   : > { %v481_v0 = vadd.f32 1e-05, %v473_v57  ;;  %v476_v1 = vmax.f32 %v468_v58, 0.0  ;;  %v467_v2 = vsub.f32 %v451_v53, %v459_v59  ;;  %1310 = vrsqrt.f32 %v482_v56  ;;  %v990_v58 = vld [vmem:[%s1886_s2] ss:$0 sm:$0xff] }
 0x101   : > { %v462_v3 = vmul.f32 %v446_v60, %v446_v60  ;;  %v445_v4 = vmul.f32 0.03125, %v309_v62  ;;  %v1136_v5 = vpop.f32.mrf.mxu0  ;;  %v1180_v6 = vpop.f32.mrf.mxu1  ;;  %v453_v8 = vmul.f32 0.03125, %v422_v63 }
 0x102   : > { %1312 = vrsqrt.f32 %v481_v0  ;;  %v475_v7 = vmax.f32 %v467_v2, 0.0  ;;  %v448_v9 = vmul.f32 0.03125, %v1136_v5  ;;  %v484_v10 = vadd.f32 1e-05, %v476_v1 }
 0x103   : > { %v470_v11 = vsub.f32 %v454_v61, %v462_v3  ;;  %v461_v12 = vmul.f32 %v445_v4, %v445_v4  ;;  %v456_v13 = vmul.f32 0.03125, %v1180_v6  ;;  %1219 = vmatprep.mubr.msk.f32.mxu0 %vm497_vm0, %v445_v4  ;;  %v319_v14 = vpop.f32.mrf.mxu0  ;;  %v432_v17 = vpop.f32.mrf.mxu1 }
 0x104   : > { %v483_v19 = vadd.f32 1e-05, %v475_v7  ;;  %v464_v20 = vmul.f32 %v448_v9, %v448_v9  ;;  %v447_v21 = vmul.f32 0.03125, %v319_v14  ;;  %1220 = vmatmul.mubr.msk.f32.gmra.mxu0 %vm497_vm0, %v446_v60  ;;  %v455_v31 = vmul.f32 0.03125, %v432_v17 }
 0x105   : > { %v478_v24 = vmax.f32 %v470_v11, 0.0  ;;  %v469_v25 = vsub.f32 %v453_v8, %v461_v12 }
 0x106   : > { %1314 = vrsqrt.f32 %v483_v19  ;;  %v472_v28 = vsub.f32 %v456_v13, %v464_v20  ;;  %v463_v29 = vmul.f32 %v447_v21, %v447_v21  ;;  %1222 = vmatprep.mubr.msk.f32.mxu0 %vm497_vm0, %v447_v21 }
 0x107   : > { %1316 = vrsqrt.f32 %v484_v10  ;;  %v477_v32 = vmax.f32 %v469_v25, 0.0  ;;  %v486_v33 = vadd.f32 1e-05, %v478_v24 }
 0x108   : > { %v480_v34 = vmax.f32 %v472_v28, 0.0  ;;  %v471_v35 = vsub.f32 %v455_v31, %v463_v29  ;;  %1223 = vmatmul.mubr.msk.f32.gmra.mxu0 %vm497_vm0, %v448_v9 }
 0x109   : > { %v485_v36 = vadd.f32 1e-05, %v477_v32 }
 0x10a   : > { %v479_v37 = vmax.f32 %v471_v35, 0.0  ;;  %v488_v38 = vadd.f32 1e-05, %v480_v34 }
 0x10b   : > { %1318 = vrsqrt.f32 %v485_v36 }
 0x10c   : > { %1320 = vrsqrt.f32 %v486_v33  ;;  %v487_v39 = vadd.f32 1e-05, %v479_v37 }
 0x10d   : > { %v1311_v40 = vpop.eup %1310 }
 0x10e   : > { %1322 = vrsqrt.f32 %v487_v39 }
 0x10f   : > { %v1313_v41 = vpop.eup %1312  ;;  %1324 = vrsqrt.f32 %v488_v38 }
 0x110   : > { %1257 = vmatprep.mubr.msk.f32.mxu1 %vm497_vm0, %v1313_v41 }
 0x111   : > { %1258 = vmatmul.mubr.msk.f32.vlgmr.msra.gmra.mxu1 %vm497_vm0, %v1311_v40 }
 0x113   : > { %v1315_v42 = vpop.eup %1314 }
 0x114   : > { %v1317_v43 = vpop.eup %1316  ;;  %1260 = vmatprep.mubr.msk.f32.mxu1 %vm497_vm0, %v1315_v42 }
 0x115   : > { %1261 = vmatmul.mubr.msk.f32.gmra.mxu1 %vm497_vm0, %v1317_v43 }
 0x118   : > { %v1319_v44 = vpop.eup %1318 }
 0x119   : > { %v1321_v45 = vpop.eup %1320  ;;  %1263 = vmatprep.mubr.msk.f32.mxu1 %vm497_vm0, %v1319_v44 }
 0x11a   : > { %1264 = vmatmul.mubr.msk.f32.gmra.mxu1 %vm497_vm0, %v1321_v45 }
 0x11b   : > { %v1323_v46 = vpop.eup %1322 }
 0x11c   : > { %1266 = vmatprep.mubr.msk.f32.mxu1 %vm497_vm0, %v1323_v46  ;;  %v1325_v47 = vpop.eup %1324 }
 0x11e   : > { %1267 = vmatmul.mubr.msk.f32.gmra.mxu1 %vm497_vm0, %v1325_v47 }
 0x1bb   : > { %v1215_v48 = vpop.f32.mrf.mxu0 }
 0x1bc   : > { %v805_v52 = vsub.f32 %v1603_v16, %v1215_v48 }
 0x1bd   : > { %v636_v49 = vpop.f32.mrf.mxu0 }
 0x1be   : > { %v804_v56 = vsub.f32 %v1598_v15, %v636_v49 }
 0x1bf   : > { %v1218_v50 = vpop.f32.mrf.mxu0 }
 0x1c0   : > { %v807_v60 = vsub.f32 %v1628_v22, %v1218_v50 }
 0x1c1   : > { %v646_v51 = vpop.f32.mrf.mxu0 }
 0x1c2   : > { %v806_v0 = vsub.f32 %v1613_v18, %v646_v51 }
 0x1c4   : > { %v1221_v53 = vpop.f32.mrf.mxu0 }
 0x1c5   : > { %v809_v7 = vsub.f32 %v1643_v26, %v1221_v53 }
 0x1c6   : > { %v656_v61 = vpop.f32.mrf.mxu0 }
 0x1c7   : > { %v808_v10 = vsub.f32 %v1633_v23, %v656_v61 }
 0x1c8   : > { %v1224_v4 = vpop.f32.mrf.mxu0 }
 0x1c9   : > { %v811_v17 = vsub.f32 %v1663_v30, %v1224_v4 }
 0x1ca   : > { %v666_v12 = vpop.f32.mrf.mxu0 }
 0x1cb   : > { %v810_v21 = vsub.f32 %v1646_v27, %v666_v12 }
 0x1d1   : > { %v1259_v54 = vpop.f32.mrf.mxu1 }
 0x1d2   : > { %v813_v57 = vmul.f32 %v1259_v54, %v805_v52 }
 0x1d3   : > { %v765_v59 = vpop.f32.mrf.mxu1 }
 0x1d4   : > { %v828_v16 = vmul.f32 %v989_v55, %v813_v57  ;;  %v812_v62 = vmul.f32 %v804_v56, %v765_v59 }
 0x1d5   : > { %v1262_v63 = vpop.f32.mrf.mxu1 }
 0x1d6   : > { %v843_v1 = vadd.f32 %v990_v58, %v828_v16  ;;  %v827_v2 = vmul.f32 %v989_v55, %v812_v62  ;;  %v815_v3 = vmul.f32 %v1262_v63, %v807_v60 }
 0x1d7   : > { %v775_v15 = vpop.f32.mrf.mxu1 }
 0x1d8   : > { %851 = vst [vmem:[%s1819_s10 + $0x8] sm:$0xff] %v843_v1  ;;  %v842_v5 = vadd.f32 %v990_v58, %v827_v2  ;;  %v830_v6 = vmul.f32 %v989_v55, %v815_v3  ;;  %v814_v22 = vmul.f32 %v806_v0, %v775_v15 }
 0x1da   : > { %850 = vst [vmem:[%s1819_s10] sm:$0xff] %v842_v5  ;;  %v845_v8 = vadd.f32 %v990_v58, %v830_v6  ;;  %v829_v18 = vmul.f32 %v989_v55, %v814_v22  ;;  %v1265_v9 = vpop.f32.mrf.mxu1 }
 0x1db   : > { %v817_v11 = vmul.f32 %v1265_v9, %v809_v7 }
 0x1dc   : > { %853 = vst [vmem:[%s1819_s10 + $0x18] sm:$0xff] %v845_v8  ;;  %v844_v13 = vadd.f32 %v990_v58, %v829_v18  ;;  %v785_v14 = vpop.f32.mrf.mxu1 }
 0x1dd   : > { %v832_v19 = vmul.f32 %v989_v55, %v817_v11  ;;  %v816_v20 = vmul.f32 %v808_v10, %v785_v14 }
 0x1de   : > { %852 = vst [vmem:[%s1819_s10 + $0x10] sm:$0xff] %v844_v13  ;;  %v1268_v26 = vpop.f32.mrf.mxu1 }
 0x1df   : > { %v847_v24 = vadd.f32 %v990_v58, %v832_v19  ;;  %v831_v23 = vmul.f32 %v989_v55, %v816_v20  ;;  %v819_v25 = vmul.f32 %v1268_v26, %v811_v17 }
 0x1e0   : > { %v795_v28 = vpop.f32.mrf.mxu1 }
 0x1e1   : > { %855 = vst [vmem:[%s1819_s10 + $0x28] sm:$0xff] %v847_v24  ;;  %v846_v29 = vadd.f32 %v990_v58, %v831_v23  ;;  %v834_v31 = vmul.f32 %v989_v55, %v819_v25  ;;  %v818_v32 = vmul.f32 %v810_v21, %v795_v28 }
 0x1e3   : > { %854 = vst [vmem:[%s1819_s10 + $0x20] sm:$0xff] %v846_v29  ;;  %v849_v30 = vadd.f32 %v990_v58, %v834_v31  ;;  %v833_v33 = vmul.f32 %v989_v55, %v818_v32 }
 0x1e5   : > { %857 = vst [vmem:[%s1819_s10 + $0x38] sm:$0xff] %v849_v30  ;;  %v848_v27 = vadd.f32 %v990_v58, %v833_v33 }
 0x1e7   : > { %856 = vst [vmem:[%s1819_s10 + $0x30] sm:$0xff] %v848_v27 }
 0x1e8   : > { %1339 = shalt.err (!%p1336_p3)
}
 0x1e9   : > { %s1340_s29 = scalar_lea.hbm %s1836_s20, 1024  ;;  %s1344_s6 = scalar_lea.hbm %s1888_s4, 2048 }
 0x1ea   : > { %p1341_p4 = scmp.ne.s32.totalorder %s1836_s20, %s1340_s29  ;;  %p1345_p9 = scmp.lt.s32.totalorder %s1836_s20, %s1888_s4 }
 0x1eb   : > { %p1346_p10 = scmp.lt.s32.totalorder %s1344_s6, %s1340_s29 }
 0x1ec   : > { %p1342_p7 = pnand %p1341_p4, %p1454_p5 }
 0x1ed   : > { %p1347_p11 = por %p1346_p10, %p1345_p9 }
 0x1ee   : > { %p1343_p8 = pneg %p1342_p7 }
 0x1f0   : > { %p1348_p12 = pnand %p1347_p11, %p1343_p8 }
 0x1f2   : > { %1351 = shalt.err (!%p1348_p12)
}
 0x1f3   : > { %s1389_s9 = smov 128   ;;  %s1390_s10 = smov 8  }
 0x1f4   : > { %1269 = dma.vmem_to_hbm [thread:$0]  (%p1454_p5), %s1838_s12, 1024, %s1836_s20, %s1844_s22, %s1389_s9, %s1389_s9, %s1390_s10  }
 0x1f5 PF: > { %p1275_p13 = scmp.ge.s32.totalorder %s1386_s18, 2  ;;  %s887_s11 = sand.u32 1, %s1374_s15  }
 0x1f6   : > { %s888_s14 = scalar_lea.sflag [#allocation3], %s887_s11 }
 0x1f7   : > { %p1272_p0 = pnand %p1275_p13, %p1458_p6 }
 0x1f9   : > { %p1273_p1 = pneg %p1272_p0 }
 0x1fb   : > { %1369 = dma.done.wait (%p1273_p1), %s888_s14, 1024  }
 0x1fc   : > { %1371 = vsyncadd (%p1273_p1), %s888_s14, 4294966272  ;;  %p14_p2 = scmp.ge.s32.totalorder %s1441_s21, 4   ;;  %s1891_s15 = smov %s1378_s16 }
 0x1fd   : > { %s1892_s16 = smov %s1382_s17  ;;  %s1893_s17 = smov %s1452_s24 }
 0x1fe   : > { %s1894_s18 = smov %s1441_s21  ;;  %16 = sbr.rel (!%p14_p2) target bundleno = 3 (0x3), region = 71 }
 0x203   :  { %893 = vsyncpa [#allocation3], 1 }
 0x204   :  { %895 = vsyncpa [#allocation3 + $0x1], 1 }

</bundles_post_ra>
